<compile_context>
chip_gen: v6e
topology: v6e:2x2x1
jax: 0.10.0
libtpu: 0.0.40
codegen_flags: <defaults>
</compile_context>

<pallas_src>
import math
import functools

import jax
import jax.numpy as jnp
from jax.experimental import pallas as pl
from jax.experimental.pallas import tpu as pltpu


def _mha_kernel(q_ref, k_ref, v_ref, bias_ref,
                wq_ref, wk_ref, wv_ref, wo_ref,
                o_ref, *, num_heads):
    # Whole-problem views (no grid):
    #   q/k/v_ref : (B*S, D) in compute dtype
    #   bias_ref  : (B*S, B*S) f32 additive bias (user mask + cross-batch -1e9)
    #   wq/wk/wv_ref : (D, D)   wo_ref : (D, D)   o_ref : (B*S, D) f32
    BS, D = q_ref.shape
    H = num_heads
    dk = D // H
    cd = q_ref.dtype  # MXU operand dtype (f32 or bf16)

    # Full-width 2D projections; 1/sqrt(d_k) already folded into W_q.
    # preferred_element_type=cd: f32 MXU accumulation, single cast to cd fused in.
    qp = jnp.dot(q_ref[...], wq_ref[...], preferred_element_type=cd)   # (BS, D)
    kp = jnp.dot(k_ref[...], wk_ref[...], preferred_element_type=cd)   # (BS, D)
    vp = jnp.dot(v_ref[...], wv_ref[...], preferred_element_type=cd)   # (BS, D)

    # Head split: heads live in contiguous d_k-lane chunks of the projected
    # activations -> static lane slices stacked on a leading batch axis.
    qh = jnp.stack([qp[:, h * dk:(h + 1) * dk] for h in range(H)], axis=0)  # (H, BS, dk)
    kh = jnp.stack([kp[:, h * dk:(h + 1) * dk] for h in range(H)], axis=0)  # (H, BS, dk)
    vh = jnp.stack([vp[:, h * dk:(h + 1) * dk] for h in range(H)], axis=0)  # (H, BS, dk)

    # All-pairs scores over the folded batch*seq rows, one batched contraction
    # for every head.  Cross-batch pairs get -1e9 from bias_ref, so the f32
    # softmax gives them exactly-zero weight (matches masked_fill semantics).
    scores = jnp.einsum('hqd,hkd->hqk', qh, kh,
                        preferred_element_type=jnp.float32)     # (H, BS, BS) f32
    scores = scores + bias_ref[...][None, :, :]

    # Softmax in float32 (required for the -1e9 mask bias; v5e has no bf16 VPU/EUP).
    m = jnp.max(scores, axis=-1, keepdims=True)
    p = jnp.exp(scores - m)
    denom = jnp.sum(p, axis=-1, keepdims=True)
    attn = p * pl.reciprocal(denom, approx=True)   # approx recip rides the EUP slot
    # TODO(synk): nn.Dropout(attn) is identity (inference mode).

    # attn @ V per head (batched), then merge heads back into d_model lanes and
    # do the output projection as ONE full-width matmul (B*S, D) @ (D, D).
    ctx = jnp.einsum('hqk,hkd->hqd', attn.astype(cd), vh,
                     preferred_element_type=cd)                 # (H, BS, dk)
    ctx2 = jnp.concatenate([ctx[h] for h in range(H)], axis=-1)  # (BS, D), cheap lane concat
    o_ref[...] = jnp.dot(ctx2, wo_ref[...],
                         preferred_element_type=jnp.float32).astype(o_ref.dtype)


def multi_head_attention(q, k, v, mask, w_q, w_k, w_v, w_o, *, num_heads,
                         compute_dtype=jnp.float32):
    """q,k,v: (B,S,D); mask: (B,1,S,S) of 0/1 (or None); w_*: torch nn.Linear
    weights of shape (d_model, d_model) (out, in). Returns (B,S,D) float32."""
    B, S, D = q.shape
    assert D % num_heads == 0, "d_model is not divisible by num_heads"
    H = num_heads
    dk = D // H
    BS = B * S
    cd = compute_dtype

    # Host-side weight prep: (out,in) -> (in,out); fold 1/sqrt(d_k) into W_q.
    scale = jnp.float32(1.0 / math.sqrt(dk))
    wq_t = (w_q.T.astype(jnp.float32) * scale).astype(cd)   # (D, D)
    wk_t = w_k.T.astype(cd)                                  # (D, D)
    wv_t = w_v.T.astype(cd)                                  # (D, D)
    wo_t = w_o.T.astype(cd)                                  # (D, D)

    # Fold the batch into rows.
    q_flat = q.reshape(BS, D).astype(cd)
    k_flat = k.reshape(BS, D).astype(cd)
    v_flat = v.reshape(BS, D).astype(cd)

    # Build the (B*S, B*S) additive f32 bias once on the host:
    #   * per-batch diagonal blocks carry the user mask (-1e9 where mask == 0),
    #   * all cross-batch entries are -1e9 so the folded softmax ignores them.
    # (A fully-masked row is degenerate in the PyTorch reference as well.)
    if mask is None:
        user_bias = jnp.zeros((B, S, S), jnp.float32)
    else:
        assert mask.shape == (B, 1, S, S)
        user_bias = jnp.where(mask[:, 0] == 0, jnp.float32(-1.0e9), jnp.float32(0.0))
    row = jnp.arange(BS)
    col = jnp.arange(BS)
    same_batch = (row[:, None] // S) == (col[None, :] // S)
    user_full = user_bias[row[:, None] // S, row[:, None] % S, col[None, :] % S]
    bias_full = jnp.where(same_batch, user_full, jnp.float32(-1.0e9)).astype(jnp.float32)

    kernel = functools.partial(_mha_kernel, num_heads=H)
    vmem_spec = pl.BlockSpec(memory_space=pltpu.MemorySpace.VMEM)  # whole array in VMEM

    out_flat = pl.pallas_call(
        kernel,
        out_shape=jax.ShapeDtypeStruct((BS, D), jnp.float32),
        in_specs=[vmem_spec] * 8,
        out_specs=vmem_spec,
    )(q_flat, k_flat, v_flat, bias_full, wq_t, wk_t, wv_t, wo_t)

    return out_flat.reshape(B, S, D)


def _reference_mha(q, k, v, mask, w_q, w_k, w_v, w_o, num_heads):
    """Pure-JAX mirror of the PyTorch forward (dropout = identity), float32."""
    B, S, D = q.shape
    d_k = D // num_heads
    query = (q @ w_q.T).reshape(B, S, num_heads, d_k).transpose(0, 2, 1, 3)
    key = (k @ w_k.T).reshape(B, S, num_heads, d_k).transpose(0, 2, 1, 3)
    value = (v @ w_v.T).reshape(B, S, num_heads, d_k).transpose(0, 2, 1, 3)
    scores = jnp.einsum("bhqd,bhkd->bhqk", query, key) / math.sqrt(d_k)
    if mask is not None:
        scores = jnp.where(mask == 0, -1.0e9, scores)
    attn = jax.nn.softmax(scores, axis=-1)
    x = jnp.einsum("bhqk,bhkd->bhqd", attn, value)
    x = x.transpose(0, 2, 1, 3).reshape(B, S, D)
    return x @ w_o.T


if __name__ == "__main__":
    # Small config consistent with the module: d_model=32, num_heads=4, seq=8, batch=2.
    B, S, D, H = 2, 8, 32, 4

    key = jax.random.PRNGKey(0)
    kq, kk, kv, kwq, kwk, kwv, kwo = jax.random.split(key, 7)

    q = jax.random.normal(kq, (B, S, D), dtype=jnp.float32)
    k = jax.random.normal(kk, (B, S, D), dtype=jnp.float32)
    v = jax.random.normal(kv, (B, S, D), dtype=jnp.float32)

    # Deterministic nn.Linear(d_model, d_model, bias=False) weights, torch layout (out, in).
    bound = 1.0 / math.sqrt(D)
    w_q = jax.random.uniform(kwq, (D, D), jnp.float32, -bound, bound)
    w_k = jax.random.uniform(kwk, (D, D), jnp.float32, -bound, bound)
    w_v = jax.random.uniform(kwv, (D, D), jnp.float32, -bound, bound)
    w_o = jax.random.uniform(kwo, (D, D), jnp.float32, -bound, bound)

    # Causal-style 0/1 mask, shape (B, 1, S, S), broadcast over heads.
    causal = jnp.tril(jnp.ones((S, S), dtype=jnp.float32))
    mask = jnp.broadcast_to(causal[None, None, :, :], (B, 1, S, S))

    ref = _reference_mha(q, k, v, mask, w_q, w_k, w_v, w_o, H)

    # Float32 MXU operands (default; recommended on v5e).
    out = multi_head_attention(q, k, v, mask, w_q, w_k, w_v, w_o, num_heads=H)
    out = jax.block_until_ready(out)
    assert out.shape == (B, S, D)
    assert jnp.allclose(out, ref, atol=1e-2, rtol=1e-2), "f32 kernel mismatch vs reference"

    # bf16 MXU operands with f32 score/softmax accumulation (recommended for v6e/v7x).
    out_bf16 = multi_head_attention(q, k, v, mask, w_q, w_k, w_v, w_o,
                                    num_heads=H, compute_dtype=jnp.bfloat16)
    out_bf16 = jax.block_until_ready(out_bf16)
    assert jnp.allclose(out_bf16, ref, atol=1e-1, rtol=1e-1), "bf16 kernel mismatch vs reference"

    print("KERNEL_OK")
</pallas_src>

<mosaic_0001>
module attributes {stable_mosaic.version = 11 : i64} {
  func.func @_mha_kernel(%arg0: memref<16x32xf32, #tpu.memory_space<vmem>>, %arg1: memref<16x32xf32, #tpu.memory_space<vmem>>, %arg2: memref<16x32xf32, #tpu.memory_space<vmem>>, %arg3: memref<16x16xf32, #tpu.memory_space<vmem>>, %arg4: memref<32x32xf32, #tpu.memory_space<vmem>>, %arg5: memref<32x32xf32, #tpu.memory_space<vmem>>, %arg6: memref<32x32xf32, #tpu.memory_space<vmem>>, %arg7: memref<32x32xf32, #tpu.memory_space<vmem>>, %arg8: memref<16x32xf32, #tpu.memory_space<vmem>>) attributes {dimension_semantics = [], scalar_prefetch = 0 : i64, scratch_operands = 0 : i64, tpu.core_type = #tpu.core_type<tc>} {
    %c0 = arith.constant 0 : index
    %c0_0 = arith.constant 0 : index
    %0 = vector.load %arg0[%c0, %c0_0] : memref<16x32xf32, #tpu.memory_space<vmem>>, vector<16x32xf32>
    %c0_1 = arith.constant 0 : index
    %c0_2 = arith.constant 0 : index
    %1 = vector.load %arg4[%c0_1, %c0_2] : memref<32x32xf32, #tpu.memory_space<vmem>>, vector<32x32xf32>
    %cst = arith.constant dense<0.000000e+00> : vector<16x32xf32>
    %2 = tpu.matmul %0, %1, %cst {dimension_numbers = #tpu.dot_dimension_numbers<[1], [0], [0], [1], [0, 0, 1, 1], [], []>} : vector<16x32xf32>, vector<32x32xf32>, vector<16x32xf32> -> vector<16x32xf32>
    %c0_3 = arith.constant 0 : index
    %c0_4 = arith.constant 0 : index
    %3 = vector.load %arg1[%c0_3, %c0_4] : memref<16x32xf32, #tpu.memory_space<vmem>>, vector<16x32xf32>
    %c0_5 = arith.constant 0 : index
    %c0_6 = arith.constant 0 : index
    %4 = vector.load %arg5[%c0_5, %c0_6] : memref<32x32xf32, #tpu.memory_space<vmem>>, vector<32x32xf32>
    %cst_7 = arith.constant dense<0.000000e+00> : vector<16x32xf32>
    %5 = tpu.matmul %3, %4, %cst_7 {dimension_numbers = #tpu.dot_dimension_numbers<[1], [0], [0], [1], [0, 0, 1, 1], [], []>} : vector<16x32xf32>, vector<32x32xf32>, vector<16x32xf32> -> vector<16x32xf32>
    %c0_8 = arith.constant 0 : index
    %c0_9 = arith.constant 0 : index
    %6 = vector.load %arg2[%c0_8, %c0_9] : memref<16x32xf32, #tpu.memory_space<vmem>>, vector<16x32xf32>
    %c0_10 = arith.constant 0 : index
    %c0_11 = arith.constant 0 : index
    %7 = vector.load %arg6[%c0_10, %c0_11] : memref<32x32xf32, #tpu.memory_space<vmem>>, vector<32x32xf32>
    %cst_12 = arith.constant dense<0.000000e+00> : vector<16x32xf32>
    %8 = tpu.matmul %6, %7, %cst_12 {dimension_numbers = #tpu.dot_dimension_numbers<[1], [0], [0], [1], [0, 0, 1, 1], [], []>} : vector<16x32xf32>, vector<32x32xf32>, vector<16x32xf32> -> vector<16x32xf32>
    %9 = vector.extract_strided_slice %2 {offsets = [0, 0], sizes = [16, 8], strides = [1, 1]} : vector<16x32xf32> to vector<16x8xf32>
    %10 = vector.extract_strided_slice %2 {offsets = [0, 8], sizes = [16, 8], strides = [1, 1]} : vector<16x32xf32> to vector<16x8xf32>
    %11 = vector.extract_strided_slice %2 {offsets = [0, 16], sizes = [16, 8], strides = [1, 1]} : vector<16x32xf32> to vector<16x8xf32>
    %12 = vector.extract_strided_slice %2 {offsets = [0, 24], sizes = [16, 8], strides = [1, 1]} : vector<16x32xf32> to vector<16x8xf32>
    %13 = vector.shape_cast %9 : vector<16x8xf32> to vector<1x16x8xf32>
    %14 = vector.shape_cast %10 : vector<16x8xf32> to vector<1x16x8xf32>
    %15 = vector.shape_cast %11 : vector<16x8xf32> to vector<1x16x8xf32>
    %16 = vector.shape_cast %12 : vector<16x8xf32> to vector<1x16x8xf32>
    %17 = tpu.concatenate %13, %14, %15, %16 in 0 : vector<1x16x8xf32>, vector<1x16x8xf32>, vector<1x16x8xf32>, vector<1x16x8xf32> -> vector<4x16x8xf32>
    %18 = vector.extract_strided_slice %5 {offsets = [0, 0], sizes = [16, 8], strides = [1, 1]} : vector<16x32xf32> to vector<16x8xf32>
    %19 = vector.extract_strided_slice %5 {offsets = [0, 8], sizes = [16, 8], strides = [1, 1]} : vector<16x32xf32> to vector<16x8xf32>
    %20 = vector.extract_strided_slice %5 {offsets = [0, 16], sizes = [16, 8], strides = [1, 1]} : vector<16x32xf32> to vector<16x8xf32>
    %21 = vector.extract_strided_slice %5 {offsets = [0, 24], sizes = [16, 8], strides = [1, 1]} : vector<16x32xf32> to vector<16x8xf32>
    %22 = vector.shape_cast %18 : vector<16x8xf32> to vector<1x16x8xf32>
    %23 = vector.shape_cast %19 : vector<16x8xf32> to vector<1x16x8xf32>
    %24 = vector.shape_cast %20 : vector<16x8xf32> to vector<1x16x8xf32>
    %25 = vector.shape_cast %21 : vector<16x8xf32> to vector<1x16x8xf32>
    %26 = tpu.concatenate %22, %23, %24, %25 in 0 : vector<1x16x8xf32>, vector<1x16x8xf32>, vector<1x16x8xf32>, vector<1x16x8xf32> -> vector<4x16x8xf32>
    %27 = vector.extract_strided_slice %8 {offsets = [0, 0], sizes = [16, 8], strides = [1, 1]} : vector<16x32xf32> to vector<16x8xf32>
    %28 = vector.extract_strided_slice %8 {offsets = [0, 8], sizes = [16, 8], strides = [1, 1]} : vector<16x32xf32> to vector<16x8xf32>
    %29 = vector.extract_strided_slice %8 {offsets = [0, 16], sizes = [16, 8], strides = [1, 1]} : vector<16x32xf32> to vector<16x8xf32>
    %30 = vector.extract_strided_slice %8 {offsets = [0, 24], sizes = [16, 8], strides = [1, 1]} : vector<16x32xf32> to vector<16x8xf32>
    %31 = vector.shape_cast %27 : vector<16x8xf32> to vector<1x16x8xf32>
    %32 = vector.shape_cast %28 : vector<16x8xf32> to vector<1x16x8xf32>
    %33 = vector.shape_cast %29 : vector<16x8xf32> to vector<1x16x8xf32>
    %34 = vector.shape_cast %30 : vector<16x8xf32> to vector<1x16x8xf32>
    %35 = tpu.concatenate %31, %32, %33, %34 in 0 : vector<1x16x8xf32>, vector<1x16x8xf32>, vector<1x16x8xf32>, vector<1x16x8xf32> -> vector<4x16x8xf32>
    "tpu.trace_start"() <{level = 10 : i32, message = "hqd,hkd->hqk"}> : () -> ()
    %cst_13 = arith.constant dense<0.000000e+00> : vector<4x16x16xf32>
    %36 = tpu.matmul %17, %26, %cst_13 {dimension_numbers = #tpu.dot_dimension_numbers<[2], [2], [1], [1], [0, 0, 0, 1, 1, 1], [0], [0]>} : vector<4x16x8xf32>, vector<4x16x8xf32>, vector<4x16x16xf32> -> vector<4x16x16xf32>
    "tpu.trace_stop"() : () -> ()
    %c0_14 = arith.constant 0 : index
    %c0_15 = arith.constant 0 : index
    %37 = vector.load %arg3[%c0_14, %c0_15] : memref<16x16xf32, #tpu.memory_space<vmem>>, vector<16x16xf32>
    %38 = vector.shape_cast %37 : vector<16x16xf32> to vector<1x16x16xf32>
    %39 = vector.broadcast %38 : vector<1x16x16xf32> to vector<4x16x16xf32>
    %40 = arith.addf %36, %39 : vector<4x16x16xf32>
    %cst_16 = arith.constant dense<0xFF800000> : vector<4x16xf32>
    %41 = vector.multi_reduction <maximumf>, %40, %cst_16 [2] : vector<4x16x16xf32> to vector<4x16xf32>
    %42 = vector.shape_cast %41 : vector<4x16xf32> to vector<4x16x1xf32>
    %43 = vector.broadcast %42 : vector<4x16x1xf32> to vector<4x16x16xf32>
    %44 = arith.subf %40, %43 : vector<4x16x16xf32>
    %45 = math.exp %44 : vector<4x16x16xf32>
    %cst_17 = arith.constant dense<0.000000e+00> : vector<4x16xf32>
    %46 = vector.multi_reduction <add>, %45, %cst_17 [2] : vector<4x16x16xf32> to vector<4x16xf32>
    %47 = vector.shape_cast %46 : vector<4x16xf32> to vector<4x16x1xf32>
    %48 = tpu.reciprocal %47 {approx = true} : vector<4x16x1xf32> -> vector<4x16x1xf32>
    %49 = vector.broadcast %48 : vector<4x16x1xf32> to vector<4x16x16xf32>
    %50 = arith.mulf %45, %49 : vector<4x16x16xf32>
    "tpu.trace_start"() <{level = 10 : i32, message = "hqk,hkd->hqd"}> : () -> ()
    %cst_18 = arith.constant dense<0.000000e+00> : vector<4x16x8xf32>
    %51 = tpu.matmul %50, %35, %cst_18 {dimension_numbers = #tpu.dot_dimension_numbers<[2], [1], [1], [2], [0, 0, 0, 1, 1, 2], [0], [0]>} : vector<4x16x16xf32>, vector<4x16x8xf32>, vector<4x16x8xf32> -> vector<4x16x8xf32>
    "tpu.trace_stop"() : () -> ()
    %52 = vector.extract_strided_slice %51 {offsets = [0, 0, 0], sizes = [1, 16, 8], strides = [1, 1, 1]} : vector<4x16x8xf32> to vector<1x16x8xf32>
    %53 = vector.shape_cast %52 : vector<1x16x8xf32> to vector<16x8xf32>
    %54 = vector.extract_strided_slice %51 {offsets = [1, 0, 0], sizes = [1, 16, 8], strides = [1, 1, 1]} : vector<4x16x8xf32> to vector<1x16x8xf32>
    %55 = vector.shape_cast %54 : vector<1x16x8xf32> to vector<16x8xf32>
    %56 = vector.extract_strided_slice %51 {offsets = [2, 0, 0], sizes = [1, 16, 8], strides = [1, 1, 1]} : vector<4x16x8xf32> to vector<1x16x8xf32>
    %57 = vector.shape_cast %56 : vector<1x16x8xf32> to vector<16x8xf32>
    %58 = vector.extract_strided_slice %51 {offsets = [3, 0, 0], sizes = [1, 16, 8], strides = [1, 1, 1]} : vector<4x16x8xf32> to vector<1x16x8xf32>
    %59 = vector.shape_cast %58 : vector<1x16x8xf32> to vector<16x8xf32>
    %60 = tpu.concatenate %53, %55, %57, %59 in 1 : vector<16x8xf32>, vector<16x8xf32>, vector<16x8xf32>, vector<16x8xf32> -> vector<16x32xf32>
    %c0_19 = arith.constant 0 : index
    %c0_20 = arith.constant 0 : index
    %61 = vector.load %arg7[%c0_19, %c0_20] : memref<32x32xf32, #tpu.memory_space<vmem>>, vector<32x32xf32>
    %cst_21 = arith.constant dense<0.000000e+00> : vector<16x32xf32>
    %62 = tpu.matmul %60, %61, %cst_21 {dimension_numbers = #tpu.dot_dimension_numbers<[1], [0], [0], [1], [0, 0, 1, 1], [], []>} : vector<16x32xf32>, vector<32x32xf32>, vector<16x32xf32> -> vector<16x32xf32>
    %c0_22 = arith.constant 0 : index
    %c0_23 = arith.constant 0 : index
    %63 = vector.load %arg8[%c0_22, %c0_23] : memref<16x32xf32, #tpu.memory_space<vmem>>, vector<16x32xf32>
    tpu.vector_store %arg8[%c0_22, %c0_23], %62 {strides = array<i32>} : memref<16x32xf32, #tpu.memory_space<vmem>>, vector<16x32xf32>,
    return
  }
}

</mosaic_0001>

<bundles_post_ra>
// kernel: tpu_custom_call.1
= control target key start
LH: loop header
LB: loop body
LE: loop exit
PB: predicated region body
PF: predicated region fallthrough
CT: control target
= control target key end

     0   :  { %13 = vsyncpa [#allocation3], 0  ;;  %s1975_s0 = inlined_call_operand.hbm [shape: f32[16,32], index: 0, kind: input, shape index: {}]   ;;  %s1976_s1 = inlined_call_operand.hbm [shape: f32[16,32], index: 1, kind: input, shape index: {}]   ;;  %s1977_s2 = inlined_call_operand.hbm [shape: f32[16,32], index: 2, kind: input, shape index: {}]   ;;  %s1978_s3 = inlined_call_operand.hbm [shape: f32[16,16], index: 3, kind: input, shape index: {}]   ;;  %s1979_s4 = inlined_call_operand.hbm [shape: f32[32,32], index: 4, kind: input, shape index: {}]   ;;  %s1980_s5 = inlined_call_operand.hbm [shape: f32[32,32], index: 5, kind: input, shape index: {}]   ;;  %s1981_s6 = inlined_call_operand.hbm [shape: f32[32,32], index: 6, kind: input, shape index: {}]   ;;  %s1982_s7 = inlined_call_operand.hbm [shape: f32[32,32], index: 7, kind: input, shape index: {}]   ;;  %s1983_s8 = inlined_call_operand.hbm [shape: f32[16,32], index: 8, kind: output, shape index: {}]  }
   0x1   :  { %14 = vsyncpa [#allocation6], 0 }
   0x2   :  { %15 = vsyncpa [#allocation9], 0 }
   0x3   :  { %16 = vsyncpa [#allocation12], 0 }
   0x4   :  { %17 = vsyncpa [#allocation15], 0 }
   0x5   :  { %18 = vsyncpa [#allocation4], 0  ;;  %s1764_s27 = smov [#allocation5]   ;;  %s1765_s29 = smov [#allocation8]  }
   0x6   :  { %s36_s28 = sshll.u32 %s1764_s27, 4  ;;  %s60_s30 = sshll.u32 %s1765_s29, 4  ;;  %s37_s28 = int_to_ptr.vmem [resolvable:$true] %s36_s28  ;;  %s61_s30 = int_to_ptr.vmem [resolvable:$true] %s60_s30 }
   0x7   :  { %s1580_s9 = scalar_lea.vmem %s37_s28, 256  ;;  %p1585_p1 = scmp.lt.s32.totalorder %s37_s28, %s37_s28 }
   0x8   :  { %p1581_p0 = scmp.ne.s32.totalorder %s37_s28, %s1580_s9  ;;  %p1586_p2 = scmp.lt.s32.totalorder %s1580_s9, %s1580_s9 }
   0xa   :  { %p1587_p3 = por %p1586_p2, %p1585_p1 }
   0xc   :  { %p1588_p4 = pnand %p1587_p3, %p1581_p0 }
   0xe   :  { %1591 = shalt.err (!%p1588_p4)
}
   0xf   :  { %s1766_s10 = smov 128   ;;  %s1767_s11 = smov 8  }
  0x10   :  { %42 = dma.hbm_to_vmem [thread:$0]  %s1976_s1, 256, %s37_s28, [#allocation6], %s1766_s10, %s1766_s10, %s1767_s11  }
  0x11   :  { %s1600_s14 = scalar_lea.vmem %s61_s30, 256  ;;  %p1605_p6 = scmp.lt.s32.totalorder %s61_s30, %s61_s30 }
  0x12   :  { %p1601_p5 = scmp.ne.s32.totalorder %s61_s30, %s1600_s14  ;;  %p1606_p7 = scmp.lt.s32.totalorder %s1600_s14, %s1600_s14 }
  0x14   :  { %p1607_p8 = por %p1606_p7, %p1605_p6 }
  0x16   :  { %p1608_p9 = pnand %p1607_p8, %p1601_p5 }
  0x18   :  { %1611 = shalt.err (!%p1608_p9)
}
  0x19   :  { %66 = dma.hbm_to_vmem [thread:$0]  %s1978_s3, 256, %s61_s30, [#allocation9], %s1766_s10, %s1766_s10, %s1767_s11  }
  0x1a   :  { %s1768_s17 = smov [#allocation11]   ;;  %s1769_s19 = smov [#allocation2]  }
  0x1b   :  { %s84_s18 = sshll.u32 %s1768_s17, 4  ;;  %s24_s20 = sshll.u32 %s1769_s19, 4  ;;  %s85_s18 = int_to_ptr.vmem [resolvable:$true] %s84_s18  ;;  %s25_s20 = int_to_ptr.vmem [resolvable:$true] %s24_s20 }
  0x1c   :  { %s1620_s1 = scalar_lea.vmem %s85_s18, 512  ;;  %p1625_p11 = scmp.lt.s32.totalorder %s85_s18, %s85_s18 }
  0x1d   :  { %p1621_p10 = scmp.ne.s32.totalorder %s85_s18, %s1620_s1  ;;  %p1626_p12 = scmp.lt.s32.totalorder %s1620_s1, %s1620_s1 }
  0x1f   :  { %p1627_p13 = por %p1626_p12, %p1625_p11 }
  0x21   :  { %p1628_p0 = pnand %p1627_p13, %p1621_p10 }
  0x23   :  { %1631 = shalt.err (!%p1628_p0)
}
  0x24   :  { %90 = dma.hbm_to_vmem [thread:$0]  %s1980_s5, 512, %s85_s18, [#allocation12], %s1766_s10, %s1766_s10, %s1767_s11  }
  0x25   :  { %s1640_s3 = scalar_lea.vmem %s25_s20, 256  ;;  %p1645_p2 = scmp.lt.s32.totalorder %s25_s20, %s25_s20 }
  0x26   :  { %p1641_p1 = scmp.ne.s32.totalorder %s25_s20, %s1640_s3  ;;  %p1646_p3 = scmp.lt.s32.totalorder %s1640_s3, %s1640_s3 }
  0x28   :  { %p1647_p4 = por %p1646_p3, %p1645_p2 }
  0x2a   :  { %p1648_p5 = pnand %p1647_p4, %p1641_p1 }
  0x2c   :  { %1651 = shalt.err (!%p1648_p5)
}
  0x2d   :  { %30 = dma.hbm_to_vmem [thread:$0]  %s1975_s0, 256, %s25_s20, [#allocation3], %s1766_s10, %s1766_s10, %s1767_s11  }
  0x2e   :  { %s1770_s25 = smov [#allocation7]   ;;  %s1771_s27 = smov [#allocation10]  }
  0x2f   :  { %s48_s26 = sshll.u32 %s1770_s25, 4  ;;  %s72_s28 = sshll.u32 %s1771_s27, 4  ;;  %s49_s26 = int_to_ptr.vmem [resolvable:$true] %s48_s26  ;;  %s73_s28 = int_to_ptr.vmem [resolvable:$true] %s72_s28 }
  0x30   :  { %s1660_s5 = scalar_lea.vmem %s49_s26, 256  ;;  %p1665_p7 = scmp.lt.s32.totalorder %s49_s26, %s49_s26 }
  0x31   :  { %p1661_p6 = scmp.ne.s32.totalorder %s49_s26, %s1660_s5  ;;  %p1666_p8 = scmp.lt.s32.totalorder %s1660_s5, %s1660_s5 }
  0x33   :  { %p1667_p9 = por %p1666_p8, %p1665_p7 }
  0x35   :  { %p1668_p10 = pnand %p1667_p9, %p1661_p6 }
  0x37   :  { %1671 = shalt.err (!%p1668_p10)
}
  0x38   :  { %54 = dma.hbm_to_vmem [thread:$0]  %s1977_s2, 256, %s49_s26, [#allocation6], %s1766_s10, %s1766_s10, %s1767_s11  }
  0x39   :  { %s1680_s0 = scalar_lea.vmem %s73_s28, 512  ;;  %p1685_p12 = scmp.lt.s32.totalorder %s73_s28, %s73_s28 }
  0x3a   :  { %p1681_p11 = scmp.ne.s32.totalorder %s73_s28, %s1680_s0  ;;  %p1686_p13 = scmp.lt.s32.totalorder %s1680_s0, %s1680_s0 }
  0x3c   :  { %p1687_p0 = por %p1686_p13, %p1685_p12 }
  0x3e   :  { %p1688_p1 = pnand %p1687_p0, %p1681_p11 }
  0x40   :  { %1691 = shalt.err (!%p1688_p1)
}
  0x41   :  { %78 = dma.hbm_to_vmem [thread:$0]  %s1979_s4, 512, %s73_s28, [#allocation9], %s1766_s10, %s1766_s10, %s1767_s11  }
  0x42   :  { %s1772_s13 = smov [#allocation13]   ;;  %s1773_s15 = smov [#allocation14]  }
  0x43   :  { %s96_s14 = sshll.u32 %s1772_s13, 4  ;;  %s108_s16 = sshll.u32 %s1773_s15, 4  ;;  %s97_s14 = int_to_ptr.vmem [resolvable:$true] %s96_s14  ;;  %s109_s16 = int_to_ptr.vmem [resolvable:$true] %s108_s16 }
  0x44   :  { %s1700_s2 = scalar_lea.vmem %s97_s14, 512  ;;  %p1705_p3 = scmp.lt.s32.totalorder %s97_s14, %s97_s14 }
  0x45   :  { %p1701_p2 = scmp.ne.s32.totalorder %s97_s14, %s1700_s2  ;;  %p1706_p4 = scmp.lt.s32.totalorder %s1700_s2, %s1700_s2 }
  0x47   :  { %p1707_p5 = por %p1706_p4, %p1705_p3 }
  0x49   :  { %p1708_p6 = pnand %p1707_p5, %p1701_p2 }
  0x4b   :  { %1711 = shalt.err (!%p1708_p6)
}
  0x4c   :  { %102 = dma.hbm_to_vmem [thread:$0]  %s1981_s6, 512, %s97_s14, [#allocation12], %s1766_s10, %s1766_s10, %s1767_s11  }
  0x4d   :  { %s1720_s4 = scalar_lea.vmem %s109_s16, 512  ;;  %p1725_p8 = scmp.lt.s32.totalorder %s109_s16, %s109_s16 }
  0x4e   :  { %p1721_p7 = scmp.ne.s32.totalorder %s109_s16, %s1720_s4  ;;  %p1726_p9 = scmp.lt.s32.totalorder %s1720_s4, %s1720_s4 }
  0x50   :  { %p1727_p10 = por %p1726_p9, %p1725_p8 }
  0x52   :  { %p1728_p11 = pnand %p1727_p10, %p1721_p7 }
  0x54   :  { %1731 = shalt.err (!%p1728_p11)
}
  0x55   :  { %114 = dma.hbm_to_vmem [thread:$0]  %s1982_s7, 512, %s109_s16, [#allocation15], %s1766_s10, %s1766_s10, %s1767_s11  }
  0x56   :  { %1752 = dma.done.wait [#allocation3], 256  }
  0x57   :  { %1753 = vsyncadd [#allocation3], 4294967040 }
  0x58   :  { %1754 = dma.done.wait [#allocation6], 512  }
  0x59   :  { %1755 = vsyncadd [#allocation6], 4294966784 }
  0x5a   :  { %1756 = dma.done.wait [#allocation9], 768  }
  0x5b   :  { %1757 = vsyncadd [#allocation9], 4294966528 }
  0x5c   :  { %1758 = dma.done.wait [#allocation12], 1024  }
  0x5d   :  { %1759 = vsyncadd [#allocation12], 4294966272 }
  0x5e   :  { %1760 = dma.done.wait [#allocation15], 512  }
  0x5f   :  { %1761 = vsyncadd [#allocation15], 4294966784  ;;  %v232_v0 = vld [vmem:[#allocation11 + $0x18] sm:$0xff]  ;;  %v231_v2 = vld [vmem:[#allocation11 + $0x10] sm:$0xff]  ;;  %vm145_vm0 = vcmask 261120   ;;  %vm451_vm1 = vcmask 64512  }
  0x60   :  { %v144_v1 = vld [vmem:[#allocation10 + $0x18] sm:$0xff]  ;;  %1435 = vmatprep.subr.mxu1 %v232_v0  ;;  %v143_v3 = vld [vmem:[#allocation10 + $0x10] sm:$0xff]  ;;  %v230_v4 = vld [vmem:[#allocation11 + $0x8] sm:$0xff]  ;;  %s1774_s6 = smov 112   ;;  %s1775_s7 = smov 120   ;;  %vm784_vm2 = vcmask 130048  }
  0x61   :  { %1424 = vmatprep.subr.mxu0 %v144_v1  ;;  %1436 = vmatpush3.msra.mxu1 %v232_v0  ;;  %v142_v5 = vld [vmem:[#allocation10 + $0x8] sm:$0xff]  ;;  %v229_v6 = vld [vmem:[#allocation11] sm:$0xff]  ;;  %v227_v7 = vld [vmem:[#allocation5] sm:$0xff]  ;;  %s1776_s1 = smov 104   ;;  %s1777_s21 = smov 16   ;;  %vm1225_vm3 = vcmask 195584  }
  0x62   :  { %1425 = vmatpush3.msra.mxu0 %v144_v1  ;;  %1437 = vmatprep.subr.mxu1 %v231_v2  ;;  %v141_v8 = vld [vmem:[#allocation10] sm:$0xff]  ;;  %v228_v9 = vld [vmem:[#allocation5 + $0x8] sm:$0xff]  ;;  %v140_v11 = vld [vmem:[#allocation2 + $0x8] sm:$0xff]  ;;  %s1778_s22 = smov 24   ;;  %s1779_s3 = smov [#allocation16]  }
  0x63   :  { %1426 = vmatprep.subr.mxu0 %v143_v3  ;;  %1438 = vmatpush3.msra.mxu1 %v231_v2  ;;  %v139_v10 = vld [vmem:[#allocation2] sm:$0xff]  ;;  %v319_v12 = vld [vmem:[#allocation13 + $0x18] sm:$0xff]  ;;  %v318_v13 = vld [vmem:[#allocation13 + $0x10] sm:$0xff]  ;;  %s1320_s23 = sshll.u32 %s1779_s3, 4  ;;  %s1321_s23 = int_to_ptr.vmem [resolvable:$true] %s1320_s23 }
  0x64   :  { %1427 = vmatpush3.msra.mxu0 %v143_v3  ;;  %1439 = vmatprep.subr.mxu1 %v230_v4  ;;  %v317_v14 = vld [vmem:[#allocation13 + $0x8] sm:$0xff]  ;;  %v316_v15 = vld [vmem:[#allocation13] sm:$0xff]  ;;  %v450_v36 = vld [vmem:[#allocation8 + $0x8] sm:$0xff]  ;;  %s1732_s24 = scalar_lea.vmem %s1321_s23, 256  ;;  %p1737_p13 = scmp.lt.s32.totalorder %s1321_s23, %s1321_s23 }
  0x65   :  { %1428 = vmatprep.subr.mxu0 %v142_v5  ;;  %1440 = vmatpush3.msra.mxu1 %v230_v4  ;;  %v314_v16 = vld [vmem:[#allocation7] sm:$0xff]  ;;  %v315_v17 = vld [vmem:[#allocation7 + $0x8] sm:$0xff]  ;;  %v449_v38 = vld [vmem:[#allocation8] sm:$0xff]  ;;  %p1733_p12 = scmp.ne.s32.totalorder %s1321_s23, %s1732_s24  ;;  %p1738_p0 = scmp.lt.s32.totalorder %s1732_s24, %s1732_s24 }
  0x66   :  { %1429 = vmatpush3.msra.mxu0 %v142_v5  ;;  %1441 = vmatprep.subr.mxu1 %v229_v6 }
  0x67   :  { %1443 = vmatprep.mubr.msk.f32.mxu1 %vm145_vm0, %v227_v7  ;;  %1442 = vmatpush3.msra.mxu1 %v229_v6  ;;  %p1739_p1 = por %p1738_p0, %p1737_p13 }
  0x68   :  { %1430 = vmatprep.subr.mxu0 %v141_v8  ;;  %1444 = vmatmul.mubr.msk.f32.vlgmr.msra.gmra.mxu1 %vm145_vm0, %v228_v9 }
  0x69   :  { %1431 = vmatpush3.msra.mxu0 %v141_v8  ;;  %1432 = vmatprep.mubr.msk.f32.mxu0 %vm145_vm0, %v139_v10  ;;  %p1740_p2 = pnand %p1739_p1, %p1733_p12 }
  0x6a   :  { %1433 = vmatmul.mubr.msk.f32.vlgmr.msra.gmra.mxu0 %vm145_vm0, %v140_v11  ;;  %1446 = vmatprep.subr.mxu0 %v319_v12 }
  0x6b   :  { %1447 = vmatpush3.msra.mxu0 %v319_v12  ;;  %1454 = vmatprep.mubr.msk.f32.mxu0 %vm145_vm0, %v314_v16 }
  0x6c   :  { %1448 = vmatprep.subr.mxu0 %v318_v13 }
  0x6d   :  { %1449 = vmatpush3.msra.mxu0 %v318_v13 }
  0x6e   :  { %1450 = vmatprep.subr.mxu0 %v317_v14 }
  0x6f   :  { %1451 = vmatpush3.msra.mxu0 %v317_v14 }
  0x70   :  { %1452 = vmatprep.subr.mxu0 %v316_v15 }
  0x71   :  { %1453 = vmatpush3.msra.mxu0 %v316_v15 }
  0x72   :  { %1455 = vmatmul.mubr.msk.f32.vlgmr.msra.gmra.mxu0 %vm145_vm0, %v315_v17 }
 0x128   :  { %v1445_v18 = vpop.f32.mrf.mxu1 }
 0x129   :  { %423 = vrot.lane.b32.xlu1 %v1445_v18, %s1774_s6  ;;  %419 = vrot.lane.b32.xlu0 %v1445_v18, %s1775_s7 }
 0x12a   :  { %1457 = vmatprep.subr.msk.mxu1 %vm451_vm1, %v1445_v18  ;;  %v1434_v19 = vpop.f32.mrf.mxu0  ;;  %v305_v20 = vpop.f32.mrf.mxu1 }
 0x12b   :  { %1458 = vmatpush3.xpose.msk.msra.mxu1 %vm451_vm1, %v1445_v18 }
 0x12c   :  { %1459 = vmatprep.subr.msk.mxu1 %vm451_vm1, %v305_v20  ;;  %v218_v21 = vpop.f32.mrf.mxu0 }
 0x12d   :  { %405 = vrot.lane.b32.xlu0 %v1434_v19, %s1775_s7  ;;  %403 = vrot.lane.b32.xlu1 %v218_v21, %s1775_s7 }
 0x12e   :  { %1461 = vmatprep.mubr.msk.f32.mxu1 %vm451_vm1, %v218_v21 }
 0x12f   :  { %1460 = vmatpush3.xpose.msk.msra.mxu1 %vm451_vm1, %v305_v20 }
 0x131   :  { %417 = vrot.lane.b32.xlu0 %v305_v20, %s1775_s7  ;;  %421 = vrot.lane.b32.xlu1 %v305_v20, %s1774_s6 }
 0x132   :  { %1462 = vmatmul.mubr.msk.f32.vlgmr.msra.gmra.mxu1 %vm451_vm1, %v1434_v19  ;;  %v1915_v34 = vpop.f32.mrf.mxu0 }
 0x134   :  { %v1918_v35 = vpop.f32.mrf.mxu0 }
 0x135   :  { %427 = vrot.lane.b32.xlu0 %v1445_v18, %s1776_s1  ;;  %407 = vrot.lane.b32.xlu1 %v218_v21, %s1774_s6 }
 0x139   :  { %409 = vrot.lane.b32.xlu0 %v1434_v19, %s1774_s6  ;;  %425 = vrot.lane.b32.xlu1 %v305_v20, %s1776_s1 }
 0x13d   :  { %411 = vrot.lane.b32.xlu0 %v218_v21, %s1776_s1  ;;  %413 = vrot.lane.b32.xlu1 %v1434_v19, %s1776_s1 }
 0x19b   :  { %v424_v22 = vpop.permute.xlu1 %423  ;;  %v420_v23 = vpop.permute.xlu0 %419 }
 0x19c   :  { %1464 = vmatprep.subr.msk.mxu0 %vm451_vm1, %v420_v23  ;;  %1471 = vmatprep.subr.msk.mxu1 %vm451_vm1, %v424_v22 }
 0x19d   :  { %1465 = vmatpush3.xpose.msk.msra.mxu0 %vm451_vm1, %v420_v23  ;;  %1472 = vmatpush3.xpose.msk.msra.mxu1 %vm451_vm1, %v424_v22 }
 0x19f   :  { %v406_v24 = vpop.permute.xlu0 %405  ;;  %v404_v25 = vpop.permute.xlu1 %403 }
 0x1a0   :  { %1468 = vmatprep.mubr.msk.f32.mxu0 %vm451_vm1, %v404_v25 }
 0x1a3   :  { %v418_v26 = vpop.permute.xlu0 %417  ;;  %v422_v27 = vpop.permute.xlu1 %421 }
 0x1a4   :  { %1466 = vmatprep.subr.msk.mxu0 %vm451_vm1, %v418_v26  ;;  %1473 = vmatprep.subr.msk.mxu1 %vm451_vm1, %v422_v27 }
 0x1a5   :  { %1467 = vmatpush3.xpose.msk.msra.mxu0 %vm451_vm1, %v418_v26  ;;  %1474 = vmatpush3.xpose.msk.msra.mxu1 %vm451_vm1, %v422_v27 }
 0x1a6   :  { %1485 = vmatprep.subr.mxu1 %v1915_v34 }
 0x1a7   :  { %v428_v28 = vpop.permute.xlu0 %427  ;;  %v408_v29 = vpop.permute.xlu1 %407 }
 0x1a8   :  { %1469 = vmatmul.mubr.msk.f32.vlgmr.msra.gmra.mxu0 %vm451_vm1, %v406_v24  ;;  %1475 = vmatprep.mubr.msk.f32.mxu1 %vm451_vm1, %v408_v29 }
 0x1a9   :  { %1478 = vmatprep.subr.msk.mxu0 %vm451_vm1, %v428_v28 }
 0x1aa   :  { %1479 = vmatpush3.xpose.msk.msra.mxu0 %vm451_vm1, %v428_v28 }
 0x1ab   :  { %v410_v30 = vpop.permute.xlu0 %409  ;;  %v426_v31 = vpop.permute.xlu1 %425 }
 0x1ac   :  { %1476 = vmatmul.mubr.msk.f32.vlgmr.msra.gmra.mxu1 %vm451_vm1, %v410_v30  ;;  %1480 = vmatprep.subr.msk.mxu0 %vm451_vm1, %v426_v31 }
 0x1ad   :  { %1486 = vmatpush3.msra.mxu1 %v1915_v34 }
 0x1ae   :  { %1481 = vmatpush3.xpose.msk.msra.mxu0 %vm451_vm1, %v426_v31  ;;  %1487 = vmatprep.subr.mxu1 %v1918_v35 }
 0x1af   :  { %v412_v32 = vpop.permute.xlu0 %411  ;;  %v414_v33 = vpop.permute.xlu1 %413  ;;  %1488 = vmatpush3.msra.mxu1 %v1918_v35 }
 0x1b0   :  { %1482 = vmatprep.mubr.msk.f32.mxu0 %vm451_vm1, %v412_v32 }
 0x1b1   :  { %1483 = vmatmul.mubr.msk.f32.vlgmr.msra.gmra.mxu0 %vm451_vm1, %v414_v33 }
 0x1f2   :  { %v1463_v37 = vpop.f32.mrf.mxu1 }
 0x1f3   :  { %v532_v39 = vadd.f32 %v1463_v37, %v450_v36 }
 0x1f4   :  { %v526_v40 = vpop.f32.mrf.mxu1 }
 0x1f5   :  { %v527_v41 = vadd.f32 %v526_v40, %v449_v38  ;;  %v788_v42 = vsel %vm784_vm2, %v532_v39, -inf }
 0x1f6   :  { %789 = vmax.xlane.f32.xlu1 %v788_v42 }
 0x1f7   :  { %v785_v43 = vsel %vm784_vm2, %v527_v41, -inf }
 0x1f8   :  { %786 = vmax.xlane.f32.xlu0 %v785_v43 }
 0x268   :  { %v1470_v44 = vpop.f32.mrf.mxu0 }
 0x269   :  { %v615_v48 = vadd.f32 %v1470_v44, %v450_v36 }
 0x26a   :  { %v609_v45 = vpop.f32.mrf.mxu0 }
 0x26b   :  { %v610_v46 = vadd.f32 %v609_v45, %v449_v38  ;;  %v794_v55 = vsel %vm784_vm2, %v615_v48, -inf }
 0x26c   :  { %v1477_v47 = vpop.f32.mrf.mxu1 }
 0x26d   :  { %v791_v49 = vsel %vm784_vm2, %v610_v46, -inf  ;;  %v698_v52 = vadd.f32 %v1477_v47, %v450_v36 }
 0x26e   :  { %v692_v50 = vpop.f32.mrf.mxu1  ;;  %792 = vmax.xlane.f32.xlu0 %v791_v49 }
 0x26f   :  { %v693_v51 = vadd.f32 %v692_v50, %v449_v38  ;;  %v800_v59 = vsel %vm784_vm2, %v698_v52, -inf }
 0x271   :  { %v1484_v53 = vpop.f32.mrf.mxu0  ;;  %v797_v54 = vsel %vm784_vm2, %v693_v51, -inf }
 0x272   :  { %798 = vmax.xlane.f32.xlu1 %v797_v54  ;;  %795 = vmax.xlane.f32.xlu0 %v794_v55  ;;  %v781_v58 = vadd.f32 %v1484_v53, %v450_v36 }
 0x273   :  { %v775_v56 = vpop.f32.mrf.mxu0 }
 0x274   :  { %v776_v57 = vadd.f32 %v775_v56, %v449_v38  ;;  %v806_v61 = vsel %vm784_vm2, %v781_v58, -inf }
 0x276   :  { %801 = vmax.xlane.f32.xlu0 %v800_v59  ;;  %v803_v60 = vsel %vm784_vm2, %v776_v57, -inf }
 0x277   :  { %804 = vmax.xlane.f32.xlu1 %v803_v60 }
 0x27a   :  { %807 = vmax.xlane.f32.xlu0 %v806_v61 }
 0x27f   :  { %v790_v62 = vpop.xlane.xlu1 %789 }
 0x280   :  { %v810_v63 = vsub.f32 %v532_v39, %v790_v62 }
 0x281   :  { %v787_v0 = vpop.xlane.xlu0 %786 }
 0x282   :  { %v819_v1 = vmul.f32 1.442695, %v810_v63  ;;  %v809_v2 = vsub.f32 %v527_v41, %v787_v0 }
 0x284   :  { %1540 = vpow2.f32 %v819_v1  ;;  %v817_v3 = vmul.f32 1.442695, %v809_v2 }
 0x286   :  { %1542 = vpow2.f32 %v817_v3 }
 0x288   :  { %433 = vrot.lane.b32.xlu1 %v1915_v34, %s1775_s7 }
 0x28c   :  { %439 = vrot.lane.b32.xlu1 %v1915_v34, %s1774_s6 }
 0x290   :  { %437 = vrot.lane.b32.xlu1 %v1918_v35, %s1774_s6  ;;  %431 = vrot.lane.b32.xlu0 %v1918_v35, %s1775_s7 }
 0x291   :  { %v1541_v4 = vpop.eup %1540 }
 0x292   :  { %v836_v5 = vsel %vm784_vm2, %v1541_v4, 0.0 }
 0x293   :  { %v1543_v6 = vpop.eup %1542 }
 0x294   :  { %v833_v7 = vsel %vm784_vm2, %v1543_v6, 0.0 }
 0x2af   :  { %837 = vadd.xlane.f32.xlu0 %v836_v5 }
 0x2b4   :  { %834 = vadd.xlane.f32.xlu1 %v833_v7  ;;  %v1229_v7 = vld [vmem:[#allocation14 + $0x8] sm:$0xff] }
 0x2f7   :  { %v793_v8 = vpop.xlane.xlu0 %792 }
 0x2f8   :  { %v811_v9 = vsub.f32 %v610_v46, %v793_v8 }
 0x2fa   :  { %v821_v10 = vmul.f32 1.442695, %v811_v9  ;;  %v1228_v9 = vld [vmem:[#allocation14] sm:$0xff] }
 0x2fb   :  { %v799_v11 = vpop.xlane.xlu1 %798  ;;  %v796_v12 = vpop.xlane.xlu0 %795 }
 0x2fc   :  { %1544 = vpow2.f32 %v821_v10  ;;  %v813_v13 = vsub.f32 %v693_v51, %v799_v11  ;;  %v812_v14 = vsub.f32 %v615_v48, %v796_v12 }
 0x2fe   :  { %v825_v15 = vmul.f32 1.442695, %v813_v13  ;;  %v823_v16 = vmul.f32 1.442695, %v812_v14 }
 0x2ff   :  { %v802_v17 = vpop.xlane.xlu0 %801 }
 0x300   :  { %1546 = vpow2.f32 %v825_v15  ;;  %v814_v18 = vsub.f32 %v698_v52, %v802_v17  ;;  %v805_v19 = vpop.xlane.xlu1 %804 }
 0x301   :  { %1548 = vpow2.f32 %v823_v16  ;;  %v815_v20 = vsub.f32 %v776_v57, %v805_v19 }
 0x302   :  { %v827_v21 = vmul.f32 1.442695, %v814_v18 }
 0x303   :  { %v829_v22 = vmul.f32 1.442695, %v815_v20  ;;  %v808_v23 = vpop.xlane.xlu0 %807 }
 0x304   :  { %1550 = vpow2.f32 %v827_v21  ;;  %v816_v24 = vsub.f32 %v781_v58, %v808_v23  ;;  %v434_v25 = vpop.permute.xlu1 %433 }
 0x305   :  { %1552 = vpow2.f32 %v829_v22  ;;  %1492 = vmatprep.subr.mxu1 %v434_v25 }
 0x306   :  { %v831_v26 = vmul.f32 1.442695, %v816_v24 }
 0x307   :  { %v432_v42 = vpop.permute.xlu0 %431 }
 0x308   :  { %1554 = vpow2.f32 %v831_v26  ;;  %v440_v41 = vpop.permute.xlu1 %439 }
 0x309   :  { %v1545_v27 = vpop.eup %1544 }
 0x30a   :  { %v839_v28 = vsel %vm784_vm2, %v1545_v27, 0.0 }
 0x30b   :  { %840 = vadd.xlane.f32.xlu1 %v839_v28 }
 0x30c   :  { %v438_v43 = vpop.permute.xlu1 %437 }
 0x30d   :  { %v1547_v29 = vpop.eup %1546 }
 0x30e   :  { %v1549_v30 = vpop.eup %1548  ;;  %v845_v31 = vsel %vm784_vm2, %v1547_v29, 0.0 }
 0x30f   :  { %846 = vadd.xlane.f32.xlu1 %v845_v31  ;;  %v842_v32 = vsel %vm784_vm2, %v1549_v30, 0.0 }
 0x310   :  { %843 = vadd.xlane.f32.xlu0 %v842_v32 }
 0x311   :  { %v1551_v33 = vpop.eup %1550 }
 0x312   :  { %v1553_v36 = vpop.eup %1552  ;;  %v848_v37 = vsel %vm784_vm2, %v1551_v33, 0.0 }
 0x313   :  { %v851_v38 = vsel %vm784_vm2, %v1553_v36, 0.0 }
 0x314   :  { %849 = vadd.xlane.f32.xlu0 %v848_v37  ;;  %852 = vadd.xlane.f32.xlu1 %v851_v38 }
 0x315   :  { %v1555_v39 = vpop.eup %1554 }
 0x316   :  { %v854_v40 = vsel %vm784_vm2, %v1555_v39, 0.0 }
 0x318   :  { %855 = vadd.xlane.f32.xlu0 %v854_v40 }
 0x325   :  { %443 = vrot.lane.b32.xlu1 %v1918_v35, %s1776_s1 }
 0x32e   :  { %445 = vrot.lane.b32.xlu0 %v1915_v34, %s1776_s1 }
 0x338   :  { %v838_v44 = vpop.xlane.xlu0 %837 }
 0x339   :  { %1556 = vrcp.f32 %v838_v44 }
 0x33d   :  { %v835_v45 = vpop.xlane.xlu1 %834 }
 0x33e   :  { %1558 = vrcp.f32 %v835_v45 }
 0x346   :  { %v1557_v46 = vpop.eup %1556 }
 0x347   :  { %v866_v49 = vmul.f32 %v1557_v46, %v1541_v4  ;;  %v1231_v4 = vld [vmem:[#allocation14 + $0x18] sm:$0xff] }
 0x348   :  { %1513 = vmatprep.subr.mxu0 %v1231_v4 }
 0x349   :  { %1514 = vmatpush3.msra.mxu0 %v1231_v4 }
 0x34b   :  { %v1559_v47 = vpop.eup %1558 }
 0x34c   :  { %v865_v48 = vmul.f32 %v1559_v47, %v1543_v6  ;;  %v1230_v6 = vld [vmem:[#allocation14 + $0x10] sm:$0xff] }
 0x34d   :  { %1515 = vmatprep.subr.mxu0 %v1230_v6 }
 0x34e   :  { %1489 = vmatprep.mubr.msk.f32.mxu1 %vm784_vm2, %v865_v48  ;;  %1516 = vmatpush3.msra.mxu0 %v1230_v6 }
 0x34f   :  { %1490 = vmatmul.mubr.msk.f32.vlgmr.msra.gmra.mxu1 %vm784_vm2, %v866_v49  ;;  %1517 = vmatprep.subr.mxu0 %v1229_v7 }
 0x350   :  { %1493 = vmatpush3.msra.mxu1 %v434_v25  ;;  %1518 = vmatpush3.msra.mxu0 %v1229_v7 }
 0x351   :  { %1494 = vmatprep.subr.mxu1 %v432_v42  ;;  %1519 = vmatprep.subr.mxu0 %v1228_v9 }
 0x352   :  { %1495 = vmatpush3.msra.mxu1 %v432_v42  ;;  %1520 = vmatpush3.msra.mxu0 %v1228_v9 }
 0x353   :  { %1499 = vmatprep.subr.mxu1 %v440_v41 }
 0x394   :  { %v841_v34 = vpop.xlane.xlu1 %840 }
 0x395   :  { %1560 = vrcp.f32 %v841_v34 }
 0x398   :  { %v847_v35 = vpop.xlane.xlu1 %846 }
 0x399   :  { %1562 = vrcp.f32 %v847_v35  ;;  %v844_v50 = vpop.xlane.xlu0 %843 }
 0x39a   :  { %1564 = vrcp.f32 %v844_v50 }
 0x39d   :  { %v850_v51 = vpop.xlane.xlu0 %849  ;;  %v853_v52 = vpop.xlane.xlu1 %852 }
 0x39e   :  { %1566 = vrcp.f32 %v850_v51 }
 0x39f   :  { %1568 = vrcp.f32 %v853_v52 }
 0x3a1   :  { %v856_v53 = vpop.xlane.xlu0 %855  ;;  %v444_v2 = vpop.permute.xlu1 %443 }
 0x3a2   :  { %v1561_v54 = vpop.eup %1560  ;;  %1570 = vrcp.f32 %v856_v53 }
 0x3a3   :  { %v867_v55 = vmul.f32 %v1561_v54, %v1545_v27 }
 0x3a5   :  { %1496 = vmatprep.mubr.msk.f32.mxu1 %vm784_vm2, %v867_v55  ;;  %v446_v63 = vpop.permute.xlu0 %445 }
 0x3a6   :  { %v1563_v56 = vpop.eup %1562 }
 0x3a7   :  { %v1565_v57 = vpop.eup %1564  ;;  %v869_v58 = vmul.f32 %v1563_v56, %v1547_v29 }
 0x3a8   :  { %v868_v59 = vmul.f32 %v1565_v57, %v1549_v30 }
 0x3aa   :  { %1497 = vmatmul.mubr.msk.f32.vlgmr.msra.gmra.mxu1 %vm784_vm2, %v868_v59 }
 0x3ab   :  { %v1567_v60 = vpop.eup %1566  ;;  %1500 = vmatpush3.msra.mxu1 %v440_v41  ;;  %1503 = vmatprep.mubr.msk.f32.mxu1 %vm784_vm2, %v869_v58 }
 0x3ac   :  { %v1569_v61 = vpop.eup %1568  ;;  %1501 = vmatprep.subr.mxu1 %v438_v43  ;;  %v870_v62 = vmul.f32 %v1567_v60, %v1551_v33 }
 0x3ad   :  { %1502 = vmatpush3.msra.mxu1 %v438_v43  ;;  %v871_v0 = vmul.f32 %v1569_v61, %v1553_v36 }
 0x3ae   :  { %1506 = vmatprep.subr.mxu1 %v446_v63  ;;  %1504 = vmatmul.mubr.msk.f32.vlgmr.msra.gmra.mxu1 %vm784_vm2, %v870_v62 }
 0x3af   :  { %v1571_v1 = vpop.eup %1570  ;;  %1507 = vmatpush3.msra.mxu1 %v446_v63  ;;  %1510 = vmatprep.mubr.msk.f32.mxu1 %vm784_vm2, %v871_v0 }
 0x3b0   :  { %1508 = vmatprep.subr.mxu1 %v444_v2  ;;  %v872_v3 = vmul.f32 %v1571_v1, %v1555_v39 }
 0x3b1   :  { %1509 = vmatpush3.msra.mxu1 %v444_v2 }
 0x3b2   :  { %1511 = vmatmul.mubr.msk.f32.vlgmr.msra.gmra.mxu1 %vm784_vm2, %v872_v3 }
 0x40f   :  { %v1491_v5 = vpop.f32.mrf.mxu1 }
 0x411   :  { %v945_v8 = vpop.f32.mrf.mxu1 }
 0x46a   :  { %v1498_v10 = vpop.f32.mrf.mxu1 }
 0x46b   :  { %1201 = vrot.lane.b32.xlu1 %v1498_v10, %s1767_s11 }
 0x46c   :  { %v1026_v11 = vpop.f32.mrf.mxu1 }
 0x46d   :  { %1199 = vrot.lane.b32.xlu0 %v1026_v11, %s1767_s11 }
 0x46e   :  { %v1505_v12 = vpop.f32.mrf.mxu1 }
 0x46f   :  { %1209 = vrot.lane.b32.xlu1 %v1505_v12, %s1777_s21 }
 0x470   :  { %v1107_v13 = vpop.f32.mrf.mxu1 }
 0x471   :  { %1207 = vrot.lane.b32.xlu0 %v1107_v13, %s1777_s21 }
 0x472   :  { %v1512_v14 = vpop.f32.mrf.mxu1 }
 0x473   :  { %1217 = vrot.lane.b32.xlu1 %v1512_v14, %s1778_s22 }
 0x474   :  { %v1188_v15 = vpop.f32.mrf.mxu1 }
 0x475   :  { %1215 = vrot.lane.b32.xlu0 %v1188_v15, %s1778_s22 }
 0x4dd   :  { %v1202_v16 = vpop.permute.xlu1 %1201 }
 0x4de   :  { %v1222_v22 = vsel %vm451_vm1, %v1491_v5, %v1202_v16 }
 0x4df   :  { %v1200_v17 = vpop.permute.xlu0 %1199 }
 0x4e0   :  { %v1221_v20 = vsel %vm451_vm1, %v945_v8, %v1200_v17 }
 0x4e1   :  { %v1210_v18 = vpop.permute.xlu1 %1209 }
 0x4e2   :  { %v1224_v25 = vsel %vm784_vm2, %v1222_v22, %v1210_v18 }
 0x4e3   :  { %v1208_v19 = vpop.permute.xlu0 %1207 }
 0x4e4   :  { %v1223_v23 = vsel %vm784_vm2, %v1221_v20, %v1208_v19 }
 0x4e5   :  { %v1218_v21 = vpop.permute.xlu1 %1217 }
 0x4e6   :  { %v1227_v27 = vsel %vm1225_vm3, %v1224_v25, %v1218_v21 }
 0x4e7   :  { %v1216_v24 = vpop.permute.xlu0 %1215 }
 0x4e8   :  { %v1226_v26 = vsel %vm1225_vm3, %v1223_v23, %v1216_v24 }
 0x4e9   :  { %1521 = vmatprep.mubr.msk.f32.mxu0 %vm145_vm0, %v1226_v26 }
 0x4ea   :  { %1522 = vmatmul.mubr.msk.f32.vlgmr.msra.gmra.mxu0 %vm145_vm0, %v1227_v27 }
 0x5aa   :  { %v1523_v28 = vpop.f32.mrf.mxu0 }
 0x5ab   :  { %1314 = vst.msk [vmem:[#allocation16 + $0x8] sm:$0xff] %vm145_vm0, %v1523_v28 }
 0x5ac   :  { %v1304_v29 = vpop.f32.mrf.mxu0 }
 0x5ad   :  { %1313 = vst.msk [vmem:[#allocation16] sm:$0xff] %vm145_vm0, %v1304_v29 }
 0x5ae   :  { %1743 = shalt.err (!%p1740_p2)
}
 0x5af   :  { %1326 = dma.vmem_to_hbm [thread:$0]  %s1321_s23, 256, %s1983_s8, [#allocation4], %s1766_s10, %s1766_s10, %s1767_s11  }
 0x5b0   :  { %1762 = dma.done.wait [#allocation4], 256  }
 0x5b1   :  { %1763 = vsyncadd [#allocation4], 4294967040 }
 0x5b2   :  { %1330 = vsyncpa [#allocation3], 1 }
 0x5b3   :  { %1331 = vsyncpa [#allocation6], 1 }
 0x5b4   :  { %1332 = vsyncpa [#allocation9], 1 }
 0x5b5   :  { %1333 = vsyncpa [#allocation12], 1 }
 0x5b6   :  { %1334 = vsyncpa [#allocation15], 1 }
 0x5b7   :  { %1335 = vsyncpa [#allocation4], 1 }

</bundles_post_ra>
